<compile_context>
chip_gen: v6e
topology: v6e:2x2x1
jax: 0.10.0
libtpu: 0.0.40
codegen_flags: <defaults>
</compile_context>

<pallas_src>
import jax
import jax.numpy as jnp
from jax.experimental import pallas as pl
from jax.experimental.pallas import tpu as pltpu


def _patch_embed_kernel(x_ref, w_ref, b_ref, o_ref):
    # x_ref: (TM, K)   tile of flattened patches, K = C * ph * pw
    # w_ref: (K, E)    projection weight (resident across the grid)
    # b_ref: (1, E)    bias in f32 (resident across the grid)
    # o_ref: (TM, E)
    acc = jnp.dot(x_ref[...], w_ref[...], preferred_element_type=jnp.float32)
    o_ref[...] = (acc + b_ref[...]).astype(o_ref.dtype)


def patch_embed_forward(x, weight, bias, patch_size, *,
                        compute_dtype=jnp.bfloat16,
                        out_dtype=None,
                        block_m=4096,
                        lane_pad_embed=False):
    """PatchEmbed forward.

    x: (B, C, H, W). weight: (E, C, ph, pw). bias: (E,).
    compute_dtype: dtype of the patch matrix / weight fed to the MXU.
        bf16 is the bandwidth-optimal production default; None (or jnp.float32
        for f32 inputs) reproduces the exact f32 Conv2d semantics.
    out_dtype: dtype of the returned embedding (None -> x.dtype).
    block_m: target M tile (rows of patches per grid step); sweep 2048-8192.
    lane_pad_embed: pad embed_dim to a multiple of 128 inside the kernel so
        output stores are unmasked full-lane stores (result is sliced back).
    """
    B, C, H, W = x.shape
    ph, pw = patch_size
    E = weight.shape[0]
    assert H % ph == 0 and W % pw == 0
    Ho, Wo = H // ph, W // pw
    num_patches = Ho * Wo
    K = C * ph * pw
    M = B * num_patches

    odt = x.dtype if out_dtype is None else out_dtype
    cdt = x.dtype if compute_dtype is None else compute_dtype

    # im2col glue (plain JAX): extract non-overlapping patches, flatten each in
    # (c, kh, kw) order to match the flattened Conv2d weight layout. Cast to the
    # compute dtype *before* the transpose so XLA fuses the cast into the
    # transpose and the materialized patch matrix is written once at the
    # reduced width when bf16 is requested.
    xp = x.astype(cdt).reshape(B, C, Ho, ph, Wo, pw)
    xp = jnp.transpose(xp, (0, 2, 4, 1, 3, 5))        # (B, Ho, Wo, C, ph, pw)
    xp = xp.reshape(M, K)                             # (M, K)

    w2d = weight.astype(cdt).reshape(E, K).T          # (K, E)
    b2d = bias.astype(jnp.float32).reshape(1, E)      # bias added in f32

    # Optional lane-dense output: pad E to the next multiple of 128 so stores
    # are unmasked. Padded columns are exactly zero and sliced off afterwards.
    E_eff = E
    if lane_pad_embed and E % 128 != 0:
        E_eff = ((E + 127) // 128) * 128
        w2d = jnp.pad(w2d, ((0, 0), (0, E_eff - E)))
        b2d = jnp.pad(b2d, ((0, 0), (0, E_eff - E)))

    in_item = jnp.dtype(cdt).itemsize
    out_item = jnp.dtype(odt).itemsize

    # M tile: big enough to amortize the ~0.35 us per-grid-step overhead, small
    # enough that the double-buffered x/out tiles stay well inside the scoped
    # VMEM limit on every generation (incl. v7x's 64 MiB physical VMEM).
    bytes_per_row = 2 * (K * in_item + E_eff * out_item)   # double-buffered
    tm_cap = max(256, ((24 * 1024 * 1024) // bytes_per_row) // 256 * 256)
    tm = min(block_m, tm_cap, M)
    if tm != M:
        tm = max(8, (tm // 256) * 256)   # multiple of 256 (MXU) and 8 (sublane)
    grid_m = pl.cdiv(M, tm)

    bytes_accessed = ((M * K + K * E_eff) * in_item
                      + E_eff * 4
                      + M * E_eff * out_item)
    cost = pl.CostEstimate(flops=2 * M * K * E_eff, transcendentals=0,
                           bytes_accessed=bytes_accessed)

    out = pl.pallas_call(
        _patch_embed_kernel,
        out_shape=jax.ShapeDtypeStruct((M, E_eff), odt),
        grid_spec=pltpu.PrefetchScalarGridSpec(
            num_scalar_prefetch=0,
            grid=(grid_m,),
            in_specs=[
                pl.BlockSpec((tm, K), lambda i: (i, 0)),       # streamed patch tiles
                pl.BlockSpec((K, E_eff), lambda i: (0, 0)),    # resident weight
                pl.BlockSpec((1, E_eff), lambda i: (0, 0)),    # resident bias
            ],
            out_specs=pl.BlockSpec((tm, E_eff), lambda i: (i, 0)),
        ),
        compiler_params=pltpu.CompilerParams(
            dimension_semantics=("parallel",),   # shard M tiles across TCs where possible
            vmem_limit_bytes=32 * 1024 * 1024,
        ),
        cost_estimate=cost,
    )(xp, w2d, b2d)

    if E_eff != E:
        out = out[:, :E]
    return out.reshape(B, num_patches, E)


if __name__ == "__main__":
    # Small shapes consistent with PatchEmbed: img_size=16, patch_size=4,
    # in_chans=4, embed_dim=32, batch=2.
    B, C, H, W = 2, 4, 16, 16
    patch_size = (4, 4)
    embed_dim = 32

    key = jax.random.PRNGKey(0)
    kx, kw, kb = jax.random.split(key, 3)
    x = jax.random.normal(kx, (B, C, H, W), dtype=jnp.float32)
    weight = jax.random.normal(
        kw, (embed_dim, C, patch_size[0], patch_size[1]), dtype=jnp.float32) * 0.02
    bias = jax.random.normal(kb, (embed_dim,), dtype=jnp.float32) * 0.02

    num_patches = (H // patch_size[0]) * (W // patch_size[1])

    # Reference: lax.conv with kernel_size == stride == patch_size (nn.Conv2d).
    ref = jax.lax.conv_general_dilated(
        x, weight, window_strides=patch_size, padding="VALID",
        dimension_numbers=("NCHW", "OIHW", "NCHW"))
    ref = ref + bias[None, :, None, None]
    ref = ref.reshape(B, embed_dim, -1).transpose(0, 2, 1)

    # Exact f32 path (bit-matches the PyTorch module's f32 Conv2d semantics).
    out_f32 = patch_embed_forward(x, weight, bias, patch_size,
                                  compute_dtype=None)
    out_f32 = jax.block_until_ready(out_f32)
    assert out_f32.shape == (B, num_patches, embed_dim)
    assert jnp.allclose(out_f32, ref, atol=1e-4, rtol=1e-4)

    # Production default: bf16 compute on the MXU, f32 accumulate + output.
    out_bf16 = patch_embed_forward(x, weight, bias, patch_size)
    out_bf16 = jax.block_until_ready(out_bf16)
    assert out_bf16.shape == (B, num_patches, embed_dim)
    assert jnp.allclose(out_bf16, ref, atol=3e-2, rtol=3e-2)

    # Lane-dense-store variant (embed_dim padded to 128 inside the kernel).
    out_pad = patch_embed_forward(x, weight, bias, patch_size,
                                  lane_pad_embed=True)
    out_pad = jax.block_until_ready(out_pad)
    assert out_pad.shape == (B, num_patches, embed_dim)
    assert jnp.allclose(out_pad, ref, atol=3e-2, rtol=3e-2)

    print("KERNEL_OK")
</pallas_src>

<mosaic_0001>
module attributes {stable_mosaic.version = 11 : i64} {
  func.func @_patch_embed_kernel(%arg0: i32, %arg1: memref<32x64xf32, #tpu.memory_space<vmem>>, %arg2: memref<64x32xf32, #tpu.memory_space<vmem>>, %arg3: memref<1x32xf32, #tpu.memory_space<vmem>>, %arg4: memref<32x32xf32, #tpu.memory_space<vmem>>) attributes {dimension_semantics = [#tpu.dimension_semantics<parallel>], iteration_bounds = array<i64: 1>, scalar_prefetch = 0 : i64, scratch_operands = 0 : i64, tpu.core_type = #tpu.core_type<tc>, window_params = [{transform_indices = @transform_0, window_bounds = array<i64: 32, 64>}, {pipeline_mode = #tpu.pipeline_mode<synchronous>, transform_indices = @transform_1, window_bounds = array<i64: 64, 32>}, {pipeline_mode = #tpu.pipeline_mode<synchronous>, transform_indices = @transform_2, window_bounds = array<i64: 1, 32>}, {transform_indices = @transform_3, window_bounds = array<i64: 32, 32>}]} {
    %c0 = arith.constant 0 : index
    %c0_0 = arith.constant 0 : index
    %0 = vector.load %arg1[%c0, %c0_0] : memref<32x64xf32, #tpu.memory_space<vmem>>, vector<32x64xf32>
    %c0_1 = arith.constant 0 : index
    %c0_2 = arith.constant 0 : index
    %1 = vector.load %arg2[%c0_1, %c0_2] : memref<64x32xf32, #tpu.memory_space<vmem>>, vector<64x32xf32>
    %cst = arith.constant dense<0.000000e+00> : vector<32x32xf32>
    %2 = tpu.matmul %0, %1, %cst {dimension_numbers = #tpu.dot_dimension_numbers<[1], [0], [0], [1], [0, 0, 1, 1], [], []>} : vector<32x64xf32>, vector<64x32xf32>, vector<32x32xf32> -> vector<32x32xf32>
    %c0_3 = arith.constant 0 : index
    %c0_4 = arith.constant 0 : index
    %3 = vector.load %arg3[%c0_3, %c0_4] : memref<1x32xf32, #tpu.memory_space<vmem>>, vector<1x32xf32>
    %4 = vector.broadcast %3 : vector<1x32xf32> to vector<32x32xf32>
    %5 = arith.addf %2, %4 : vector<32x32xf32>
    %c0_5 = arith.constant 0 : index
    %c0_6 = arith.constant 0 : index
    %6 = vector.load %arg4[%c0_5, %c0_6] : memref<32x32xf32, #tpu.memory_space<vmem>>, vector<32x32xf32>
    tpu.vector_store %arg4[%c0_5, %c0_6], %5 {strides = array<i32>} : memref<32x32xf32, #tpu.memory_space<vmem>>, vector<32x32xf32>,
    return
  }
  func.func @transform_0(%arg0: i32) -> (i32, i32) {
    %c0_i32 = arith.constant 0 : i32
    %c0_i32_0 = arith.constant 0 : i32
    return %arg0, %c0_i32 : i32, i32
  }
  func.func @transform_1(%arg0: i32) -> (i32, i32) {
    %c0_i32 = arith.constant 0 : i32
    %c0_i32_0 = arith.constant 0 : i32
    %c0_i32_1 = arith.constant 0 : i32
    return %c0_i32, %c0_i32_0 : i32, i32
  }
  func.func @transform_2(%arg0: i32) -> (i32, i32) {
    %c0_i32 = arith.constant 0 : i32
    %c0_i32_0 = arith.constant 0 : i32
    %c0_i32_1 = arith.constant 0 : i32
    return %c0_i32, %c0_i32_0 : i32, i32
  }
  func.func @transform_3(%arg0: i32) -> (i32, i32) {
    %c0_i32 = arith.constant 0 : i32
    %c0_i32_0 = arith.constant 0 : i32
    return %arg0, %c0_i32 : i32, i32
  }
}

</mosaic_0001>

<bundles_post_ra>
// kernel: tpu_custom_call.1
= control target key start
LH: loop header
LB: loop body
LE: loop exit
PB: predicated region body
PF: predicated region fallthrough
CT: control target
= control target key end

     0   :  { %s298_s0 = inlined_call_operand.vmem [shape: f32[32,64], index: 0, kind: input, shape index: {}]   ;;  %s299_s1 = inlined_call_operand.vmem [shape: f32[64,32], index: 1, kind: input, shape index: {}]   ;;  %s300_s2 = inlined_call_operand.vmem [shape: f32[1,32], index: 2, kind: input, shape index: {}]   ;;  %s301_s3 = inlined_call_operand.hbm [shape: f32[32,32], index: 3, kind: output, shape index: {}]  }
   0x1   :  { %v26_v0 = vld [vmem:[%s299_s1 + $0x38] sm:$0xff]  ;;  %v25_v1 = vld [vmem:[%s299_s1 + $0x30] sm:$0xff]  ;;  %v24_v2 = vld [vmem:[%s299_s1 + $0x28] sm:$0xff] }
   0x2   :  { %170 = vmatprep.subr.mxu0 %v26_v0  ;;  %192 = vmatprep.subr.mxu1 %v26_v0  ;;  %v23_v3 = vld [vmem:[%s299_s1 + $0x20] sm:$0xff] }
   0x3   :  { %171 = vmatpush3.msra.mxu0 %v26_v0  ;;  %200 = vmatpush3.msra.mxu1 %v26_v0 }
   0x4   :  { %172 = vmatprep.subr.mxu0 %v25_v1  ;;  %193 = vmatprep.subr.mxu1 %v25_v1 }
   0x5   :  { %173 = vmatpush3.msra.mxu0 %v25_v1  ;;  %201 = vmatpush3.msra.mxu1 %v25_v1 }
   0x6   :  { %8 = vsyncpa [#allocation3], 0  ;;  %174 = vmatprep.subr.mxu0 %v24_v2  ;;  %194 = vmatprep.subr.mxu1 %v24_v2  ;;  %v22_v4 = vld [vmem:[%s299_s1 + $0x18] sm:$0xff]  ;;  %v21_v5 = vld [vmem:[%s299_s1 + $0x10] sm:$0xff]  ;;  %vm34_vm0 = vcmask 523264   ;;  %s233_s10 = smov [#allocation2]  }
   0x7   :  { %175 = vmatpush3.msra.mxu0 %v24_v2  ;;  %202 = vmatpush3.msra.mxu1 %v24_v2  ;;  %v20_v6 = vld [vmem:[%s299_s1 + $0x8] sm:$0xff]  ;;  %v19_v7 = vld [vmem:[%s299_s1] sm:$0xff]  ;;  %v17_v9 = vld [vmem:[%s298_s0 + $0x10] sm:$0xff]  ;;  %s142_s11 = sshll.u32 %s233_s10, 4  ;;  %vm132_vm1 = vcmask 261120   ;;  %s143_s11 = int_to_ptr.vmem [resolvable:$true] %s142_s11 }
   0x8   :  { %176 = vmatprep.subr.mxu0 %v23_v3  ;;  %195 = vmatprep.subr.mxu1 %v23_v3  ;;  %v15_v8 = vld [vmem:[%s298_s0] sm:$0xff]  ;;  %v16_v10 = vld [vmem:[%s298_s0 + $0x8] sm:$0xff]  ;;  %v18_v11 = vld [vmem:[%s298_s0 + $0x18] sm:$0xff]  ;;  %s211_s0 = scalar_lea.vmem %s143_s11, 512  ;;  %p216_p1 = scmp.lt.s32.totalorder %s143_s11, %s143_s11 }
   0x9   :  { %177 = vmatpush3.msra.mxu0 %v23_v3  ;;  %203 = vmatpush3.msra.mxu1 %v23_v3  ;;  %v153_v12 = vld [vmem:[%s300_s2] ss:$0 sm:$0xff]  ;;  %p212_p0 = scmp.ne.s32.totalorder %s143_s11, %s211_s0  ;;  %p217_p2 = scmp.lt.s32.totalorder %s211_s0, %s211_s0 }
   0xa   :  { %178 = vmatprep.subr.mxu0 %v22_v4  ;;  %196 = vmatprep.subr.mxu1 %v22_v4 }
   0xb   :  { %179 = vmatpush3.msra.mxu0 %v22_v4  ;;  %204 = vmatpush3.msra.mxu1 %v22_v4  ;;  %p218_p3 = por %p217_p2, %p216_p1 }
   0xc   :  { %180 = vmatprep.subr.mxu0 %v21_v5  ;;  %197 = vmatprep.subr.mxu1 %v21_v5 }
   0xd   :  { %181 = vmatpush3.msra.mxu0 %v21_v5  ;;  %205 = vmatpush3.msra.mxu1 %v21_v5  ;;  %p219_p4 = pnand %p218_p3, %p212_p0 }
   0xe   :  { %182 = vmatprep.subr.mxu0 %v20_v6  ;;  %198 = vmatprep.subr.mxu1 %v20_v6 }
   0xf   :  { %183 = vmatpush3.msra.mxu0 %v20_v6  ;;  %206 = vmatpush3.msra.mxu1 %v20_v6 }
  0x10   :  { %184 = vmatprep.subr.mxu0 %v19_v7  ;;  %199 = vmatprep.subr.mxu1 %v19_v7 }
  0x11   :  { %185 = vmatpush3.msra.mxu0 %v19_v7  ;;  %207 = vmatpush3.msra.mxu1 %v19_v7 }
  0x12   :  { %186 = vmatprep.mubr.msk.f32.mxu0 %vm34_vm0, %v15_v8  ;;  %189 = vmatprep.mubr.msk.f32.mxu1 %vm34_vm0, %v17_v9 }
  0x13   :  { %187 = vmatmul.mubr.msk.f32.vlgmr.msra.gmra.mxu0 %vm34_vm0, %v16_v10  ;;  %190 = vmatmul.mubr.msk.f32.vlgmr.msra.gmra.mxu1 %vm34_vm0, %v18_v11 }
  0xd3   :  { %v188_v13 = vpop.f32.mrf.mxu0  ;;  %v191_v14 = vpop.f32.mrf.mxu1 }
  0xd4   :  { %v119_v15 = vadd.f32 %v188_v13, %v153_v12  ;;  %v129_v16 = vadd.f32 %v191_v14, %v153_v12 }
  0xd5   :  { %v113_v17 = vpop.f32.mrf.mxu0  ;;  %v123_v18 = vpop.f32.mrf.mxu1 }
  0xd6   :  { %134 = vst.msk [vmem:[#allocation2 + $0x8] sm:$0xff] %vm132_vm1, %v119_v15  ;;  %136 = vst.msk [vmem:[#allocation2 + $0x18] sm:$0xff] %vm132_vm1, %v129_v16  ;;  %v114_v19 = vadd.f32 %v153_v12, %v113_v17  ;;  %v124_v20 = vadd.f32 %v153_v12, %v123_v18 }
  0xd8   :  { %133 = vst.msk [vmem:[#allocation2] sm:$0xff] %vm132_vm1, %v114_v19  ;;  %135 = vst.msk [vmem:[#allocation2 + $0x10] sm:$0xff] %vm132_vm1, %v124_v20 }
  0xd9   :  { %222 = shalt.err (!%p219_p4)
}
  0xda   :  { %s234_s2 = smov 128   ;;  %s235_s12 = smov 8  }
  0xdb   :  { %148 = dma.vmem_to_hbm [thread:$0]  %s143_s11, 512, %s301_s3, [#allocation3], %s234_s2, %s234_s2, %s235_s12  }
  0xdc   :  { %231 = dma.done.wait [#allocation3], 512  }
  0xdd   :  { %232 = vsyncadd [#allocation3], 4294966784 }
  0xde   :  { %152 = vsyncpa [#allocation3], 1 }

</bundles_post_ra>
